<compile_context>
chip_gen: v7x
topology: tpu7x:2x2x1
jax: 0.10.0
libtpu: 0.0.40
codegen_flags: <defaults>
</compile_context>

<pallas_src>
import functools

import jax
import jax.numpy as jnp
from jax.experimental import pallas as pl
from jax.experimental.pallas import tpu as pltpu


# ----------------------------------------------------------------------------
# Fused kernel: embedding gather + conv (all filter sizes) + ReLU + time
# max-pool + linear, all lane-dense.
# ----------------------------------------------------------------------------
def _textcnn_fused_kernel(ids_ref, table_ref, wcat_ref, cbias_ref, lw_ref,
                          lb_ref, o_ref, *, filter_sizes, seq_len, lane):
    S = seq_len
    TBS = ids_ref.shape[0]            # block_b * S
    TB = TBS // S
    VP = table_ref.shape[0]           # vocab padded to a lane multiple

    # ---- Embedding gather as a one-hot MXU matmul (exact for 0/1 weights) ----
    iota_v = jax.lax.broadcasted_iota(jnp.int32, (TBS, VP), 1)
    onehot = jnp.where(ids_ref[...] == iota_v, 1.0, 0.0).astype(table_ref.dtype)
    emb = jnp.dot(onehot, table_ref[...],
                  preferred_element_type=jnp.float32)          # (TBS, E) exact rows
    emb = emb.astype(wcat_ref.dtype)                           # lossless (bf16 table)

    # ---- One big-M matmul covering every (filter, tap) weight slice ----------
    q = jnp.dot(emb, wcat_ref[...], preferred_element_type=jnp.float32)
    q = q.reshape(TB, S, -1)                                   # (TB, S, n_slices*128)

    # ---- Shifted adds (lane-aligned 128-wide slices) + global time max-pool --
    pooled = []
    slot = 0
    for fsz in filter_sizes:                                   # static, unrolled
        L = S - fsz + 1
        conv = q[:, 0:L, slot * lane:(slot + 1) * lane]
        for k in range(1, fsz):
            conv = conv + q[:, k:k + L, (slot + k) * lane:(slot + k + 1) * lane]
        slot += fsz
        pooled.append(jnp.max(conv, axis=1))                   # (TB, 128)
    feats = jnp.concatenate(pooled, axis=1)                    # (TB, nf*128) lane-aligned

    # Bias + ReLU hoisted past the max (both monotone => identical result).
    feats = jnp.maximum(feats + cbias_ref[...], 0.0)

    # Dropout: identity at inference time.
    # ---- Final linear, f32 end-to-end, lane-padded 128-wide output -----------
    o_ref[...] = (jnp.dot(feats, lw_ref[...],
                          preferred_element_type=jnp.float32) + lb_ref[...])


# ----------------------------------------------------------------------------
# Wrapper: weight packing / lane padding + batch-tiled pallas_call
# ----------------------------------------------------------------------------
def textcnn_forward(token_ids, params, *, filter_sizes,
                    vmem_budget_bytes=40 * 2**20):
    filter_sizes = tuple(int(f) for f in filter_sizes)
    nf = len(filter_sizes)
    LANE = 128

    table = params["embedding"]                                # (V, E) bf16
    V, E = table.shape
    B, S = token_ids.shape
    C = params[f"conv_b_{filter_sizes[0]}"].shape[1]
    O = params["linear_w"].shape[1]

    # ---- Pack / lane-pad weights (host side, once) ----------------------------
    # Vocab rows padded to a lane multiple for the one-hot matmul.
    # TODO(synk): for large vocabularies replace the one-hot matmul with a
    # scalar-prefetched per-row make_async_copy gather from an HBM-resident table.
    VP = max(LANE, ((V + LANE - 1) // LANE) * LANE)
    table_p = jnp.zeros((VP, E), table.dtype).at[:V].set(table)

    # Each (filter, tap) weight slice gets its own 128-lane slot so the kernel's
    # shifted-add slices are free, lane-aligned vreg picks.
    slices = []
    for f in filter_sizes:
        w = params[f"conv_w_{f}"]                              # (f, E, C) bf16
        for k in range(f):
            slices.append(jnp.pad(w[k], ((0, 0), (0, LANE - C))))
    wcat = jnp.concatenate(slices, axis=1)                     # (E, n_slices*128)
    NTOT = wcat.shape[1]

    cbias = jnp.concatenate(
        [jnp.pad(params[f"conv_b_{f}"].astype(jnp.float32),
                 ((0, 0), (0, LANE - C))) for f in filter_sizes],
        axis=1)                                                # (1, nf*128)
    NFL = cbias.shape[1]

    lw = params["linear_w"].astype(jnp.float32).reshape(nf, C, O)
    lw_p = jnp.zeros((nf, LANE, LANE), jnp.float32).at[:, :C, :O].set(lw)
    lw_p = lw_p.reshape(nf * LANE, LANE)                       # (nf*128, 128)
    lb_p = jnp.zeros((1, LANE), jnp.float32).at[:, :O].set(
        params["linear_b"].astype(jnp.float32))                # (1, 128)

    # ---- Batch tiling: big tiles (kernel is mem/overhead-bound), sized from a
    # v7x-safe VMEM budget (f32 q intermediate dominates). -----------------------
    per_row = (S * NTOT * 4 * 2        # f32 q + shifted-add temporaries
               + S * VP * 2            # bf16 one-hot
               + S * E * 6             # f32 + bf16 gathered embedding
               + S * LANE * 4 * 2      # lane-padded ids tile, double-buffered
               + LANE * 4 * 2)         # output tile, double-buffered
    max_block_b = max(8, (vmem_budget_bytes // per_row) // 8 * 8)
    if B <= max_block_b and B < 64:
        block_b = B                    # single tiny tile (demo path)
    else:
        # >= 2 grid steps so v7x's second TensorCore gets a tile to run.
        block_b = min(max_block_b, max(8, (((B + 1) // 2) // 8) * 8))
    Bp = ((B + block_b - 1) // block_b) * block_b
    grid = (Bp // block_b,)

    ids = token_ids.astype(jnp.int32).reshape(B * S, 1)
    if Bp != B:
        ids = jnp.pad(ids, ((0, (Bp - B) * S), (0, 0)))

    flops = 2 * Bp * S * (VP * E + E * NTOT) + 2 * Bp * NFL * LANE
    bytes_accessed = (ids.size * 4 + table_p.size * 2 + wcat.size * 2
                      + cbias.size * 4 + lw_p.size * 4 + lb_p.size * 4
                      + Bp * LANE * 4)
    cost = pl.CostEstimate(flops=flops, transcendentals=0,
                           bytes_accessed=bytes_accessed)

    kernel = functools.partial(_textcnn_fused_kernel,
                               filter_sizes=filter_sizes, seq_len=S, lane=LANE)

    out = pl.pallas_call(
        kernel,
        out_shape=jax.ShapeDtypeStruct((Bp, LANE), jnp.float32),
        grid=grid,
        in_specs=[
            pl.BlockSpec((block_b * S, 1), lambda i: (i, 0)),   # token ids
            pl.BlockSpec((VP, E), lambda i: (0, 0)),            # embedding table
            pl.BlockSpec((E, NTOT), lambda i: (0, 0)),          # packed conv W
            pl.BlockSpec((1, NFL), lambda i: (0, 0)),           # packed conv b
            pl.BlockSpec((nf * LANE, LANE), lambda i: (0, 0)),  # padded linear W
            pl.BlockSpec((1, LANE), lambda i: (0, 0)),          # padded linear b
        ],
        out_specs=pl.BlockSpec((block_b, LANE), lambda i: (i, 0)),
        compiler_params=pltpu.CompilerParams(
            dimension_semantics=("parallel",),                  # batch -> 2 TCs on v7x
            vmem_limit_bytes=int(vmem_budget_bytes + 16 * 2**20),
        ),
        cost_estimate=cost,
    )(ids, table_p, wcat, cbias, lw_p, lb_p)
    return out[:B, :O]


# ----------------------------------------------------------------------------
# Deterministic parameters, reference check, demo run
# ----------------------------------------------------------------------------
if __name__ == "__main__":
    vocab_size = 50
    embedding_dim = 32
    out_channels = 8
    filter_sizes = (2, 3, 4)
    label_num = 4
    batch = 2
    seq_len = 16

    key = jax.random.PRNGKey(0)
    n_keys = 4 + 2 * len(filter_sizes)
    keys = jax.random.split(key, n_keys)

    params = {
        "embedding": (0.1 * jax.random.normal(
            keys[0], (vocab_size, embedding_dim))).astype(jnp.bfloat16),
        "linear_w": (0.1 * jax.random.normal(
            keys[1], (len(filter_sizes) * out_channels, label_num))
        ).astype(jnp.bfloat16),
        "linear_b": 0.1 * jax.random.normal(
            keys[2], (1, label_num), jnp.float32),
    }
    for i, fsz in enumerate(filter_sizes):
        params[f"conv_w_{fsz}"] = (0.1 * jax.random.normal(
            keys[3 + 2 * i], (fsz, embedding_dim, out_channels))
        ).astype(jnp.bfloat16)
        params[f"conv_b_{fsz}"] = 0.1 * jax.random.normal(
            keys[4 + 2 * i], (1, out_channels), jnp.float32)

    token_ids = jax.random.randint(
        keys[-1], (batch, seq_len), 0, vocab_size, jnp.int32)

    def ref_forward(ids):
        # Pure-JAX f32 reference of the PyTorch forward (same bf16 params).
        emb = params["embedding"].astype(jnp.float32)[ids]
        feats = []
        for f in filter_sizes:
            w = params[f"conv_w_{f}"].astype(jnp.float32)
            b = params[f"conv_b_{f}"]
            L = emb.shape[1] - f + 1
            acc = sum(jnp.einsum("ble,ec->blc", emb[:, k:k + L, :], w[k])
                      for k in range(f))
            act = jnp.maximum(acc + b.reshape(1, 1, -1), 0.0)
            feats.append(jnp.max(act, axis=1))
        feats = jnp.concatenate(feats, axis=1)
        return feats @ params["linear_w"].astype(jnp.float32) + params["linear_b"]

    logits = textcnn_forward(token_ids, params, filter_sizes=filter_sizes)
    jax.block_until_ready(logits)
    assert logits.shape == (batch, label_num)

    ref = ref_forward(token_ids)
    assert jnp.allclose(logits, ref, atol=1e-2, rtol=1e-2), "mismatch vs reference"
    print("KERNEL_OK")
</pallas_src>

<mosaic_0001>
module attributes {stable_mosaic.version = 11 : i64} {
  func.func @_textcnn_fused_kernel(%arg0: i32, %arg1: memref<32x1xi32, #tpu.memory_space<vmem>>, %arg2: memref<128x32xbf16, #tpu.memory_space<vmem>>, %arg3: memref<32x1152xbf16, #tpu.memory_space<vmem>>, %arg4: memref<1x384xf32, #tpu.memory_space<vmem>>, %arg5: memref<384x128xf32, #tpu.memory_space<vmem>>, %arg6: memref<1x128xf32, #tpu.memory_space<vmem>>, %arg7: memref<2x128xf32, #tpu.memory_space<vmem>>) attributes {dimension_semantics = [#tpu.dimension_semantics<parallel>], iteration_bounds = array<i64: 1>, scalar_prefetch = 0 : i64, scratch_operands = 0 : i64, tpu.core_type = #tpu.core_type<tc>, window_params = [{transform_indices = @transform_0, window_bounds = array<i64: 32, 1>}, {pipeline_mode = #tpu.pipeline_mode<synchronous>, transform_indices = @transform_1, window_bounds = array<i64: 128, 32>}, {pipeline_mode = #tpu.pipeline_mode<synchronous>, transform_indices = @transform_2, window_bounds = array<i64: 32, 1152>}, {pipeline_mode = #tpu.pipeline_mode<synchronous>, transform_indices = @transform_3, window_bounds = array<i64: 1, 384>}, {pipeline_mode = #tpu.pipeline_mode<synchronous>, transform_indices = @transform_4, window_bounds = array<i64: 384, 128>}, {pipeline_mode = #tpu.pipeline_mode<synchronous>, transform_indices = @transform_5, window_bounds = array<i64: 1, 128>}, {transform_indices = @transform_6, window_bounds = array<i64: 2, 128>}]} {
    %0 = tpu.iota {dimensions = array<i32: 1>} : vector<32x128xi32>
    %c0 = arith.constant 0 : index
    %c0_0 = arith.constant 0 : index
    %1 = vector.load %arg1[%c0, %c0_0] : memref<32x1xi32, #tpu.memory_space<vmem>>, vector<32x1xi32>
    %2 = vector.broadcast %1 : vector<32x1xi32> to vector<32x128xi32>
    %3 = arith.cmpi eq, %2, %0 : vector<32x128xi32>
    %cst = arith.constant 1.000000e+00 : f32
    %cst_1 = arith.constant 0.000000e+00 : f32
    %4 = vector.broadcast %cst : f32 to vector<32x128xf32>
    %5 = vector.broadcast %cst_1 : f32 to vector<32x128xf32>
    %6 = arith.select %3, %4, %5 : vector<32x128xi1>, vector<32x128xf32>
    %7 = arith.truncf %6 : vector<32x128xf32> to vector<32x128xbf16>
    %c0_2 = arith.constant 0 : index
    %c0_3 = arith.constant 0 : index
    %8 = vector.load %arg2[%c0_2, %c0_3] : memref<128x32xbf16, #tpu.memory_space<vmem>>, vector<128x32xbf16>
    %cst_4 = arith.constant dense<0.000000e+00> : vector<32x32xf32>
    %9 = tpu.matmul %7, %8, %cst_4 {dimension_numbers = #tpu.dot_dimension_numbers<[1], [0], [0], [1], [0, 0, 1, 1], [], []>} : vector<32x128xbf16>, vector<128x32xbf16>, vector<32x32xf32> -> vector<32x32xf32>
    %10 = arith.truncf %9 : vector<32x32xf32> to vector<32x32xbf16>
    %c0_5 = arith.constant 0 : index
    %c0_6 = arith.constant 0 : index
    %11 = vector.load %arg3[%c0_5, %c0_6] : memref<32x1152xbf16, #tpu.memory_space<vmem>>, vector<32x1152xbf16>
    %cst_7 = arith.constant dense<0.000000e+00> : vector<32x1152xf32>
    %12 = tpu.matmul %10, %11, %cst_7 {dimension_numbers = #tpu.dot_dimension_numbers<[1], [0], [0], [1], [0, 0, 1, 1], [], []>} : vector<32x32xbf16>, vector<32x1152xbf16>, vector<32x1152xf32> -> vector<32x1152xf32>
    %13 = vector.shape_cast %12 : vector<32x1152xf32> to vector<2x16x1152xf32>
    %14 = vector.extract_strided_slice %13 {offsets = [0, 0, 0], sizes = [2, 15, 128], strides = [1, 1, 1]} : vector<2x16x1152xf32> to vector<2x15x128xf32>
    %15 = vector.extract_strided_slice %13 {offsets = [0, 1, 128], sizes = [2, 15, 128], strides = [1, 1, 1]} : vector<2x16x1152xf32> to vector<2x15x128xf32>
    %16 = arith.addf %14, %15 : vector<2x15x128xf32>
    %cst_8 = arith.constant dense<0xFF800000> : vector<2x128xf32>
    %17 = vector.multi_reduction <maximumf>, %16, %cst_8 [1] : vector<2x15x128xf32> to vector<2x128xf32>
    %18 = vector.extract_strided_slice %13 {offsets = [0, 0, 256], sizes = [2, 14, 128], strides = [1, 1, 1]} : vector<2x16x1152xf32> to vector<2x14x128xf32>
    %19 = vector.extract_strided_slice %13 {offsets = [0, 1, 384], sizes = [2, 14, 128], strides = [1, 1, 1]} : vector<2x16x1152xf32> to vector<2x14x128xf32>
    %20 = arith.addf %18, %19 : vector<2x14x128xf32>
    %21 = vector.extract_strided_slice %13 {offsets = [0, 2, 512], sizes = [2, 14, 128], strides = [1, 1, 1]} : vector<2x16x1152xf32> to vector<2x14x128xf32>
    %22 = arith.addf %20, %21 : vector<2x14x128xf32>
    %cst_9 = arith.constant dense<0xFF800000> : vector<2x128xf32>
    %23 = vector.multi_reduction <maximumf>, %22, %cst_9 [1] : vector<2x14x128xf32> to vector<2x128xf32>
    %24 = vector.extract_strided_slice %13 {offsets = [0, 0, 640], sizes = [2, 13, 128], strides = [1, 1, 1]} : vector<2x16x1152xf32> to vector<2x13x128xf32>
    %25 = vector.extract_strided_slice %13 {offsets = [0, 1, 768], sizes = [2, 13, 128], strides = [1, 1, 1]} : vector<2x16x1152xf32> to vector<2x13x128xf32>
    %26 = arith.addf %24, %25 : vector<2x13x128xf32>
    %27 = vector.extract_strided_slice %13 {offsets = [0, 2, 896], sizes = [2, 13, 128], strides = [1, 1, 1]} : vector<2x16x1152xf32> to vector<2x13x128xf32>
    %28 = arith.addf %26, %27 : vector<2x13x128xf32>
    %29 = vector.extract_strided_slice %13 {offsets = [0, 3, 1024], sizes = [2, 13, 128], strides = [1, 1, 1]} : vector<2x16x1152xf32> to vector<2x13x128xf32>
    %30 = arith.addf %28, %29 : vector<2x13x128xf32>
    %cst_10 = arith.constant dense<0xFF800000> : vector<2x128xf32>
    %31 = vector.multi_reduction <maximumf>, %30, %cst_10 [1] : vector<2x13x128xf32> to vector<2x128xf32>
    %32 = tpu.concatenate %17, %23, %31 in 1 : vector<2x128xf32>, vector<2x128xf32>, vector<2x128xf32> -> vector<2x384xf32>
    %c0_11 = arith.constant 0 : index
    %c0_12 = arith.constant 0 : index
    %33 = vector.load %arg4[%c0_11, %c0_12] : memref<1x384xf32, #tpu.memory_space<vmem>>, vector<1x384xf32>
    %34 = vector.broadcast %33 : vector<1x384xf32> to vector<2x384xf32>
    %35 = arith.addf %32, %34 : vector<2x384xf32>
    %cst_13 = arith.constant 0.000000e+00 : f32
    %36 = vector.broadcast %cst_13 : f32 to vector<2x384xf32>
    %37 = arith.maximumf %35, %36 : vector<2x384xf32>
    %c0_14 = arith.constant 0 : index
    %c0_15 = arith.constant 0 : index
    %38 = vector.load %arg5[%c0_14, %c0_15] : memref<384x128xf32, #tpu.memory_space<vmem>>, vector<384x128xf32>
    %cst_16 = arith.constant dense<0.000000e+00> : vector<2x128xf32>
    %39 = tpu.matmul %37, %38, %cst_16 {dimension_numbers = #tpu.dot_dimension_numbers<[1], [0], [0], [1], [0, 0, 1, 1], [], []>} : vector<2x384xf32>, vector<384x128xf32>, vector<2x128xf32> -> vector<2x128xf32>
    %c0_17 = arith.constant 0 : index
    %c0_18 = arith.constant 0 : index
    %40 = vector.load %arg6[%c0_17, %c0_18] : memref<1x128xf32, #tpu.memory_space<vmem>>, vector<1x128xf32>
    %41 = vector.broadcast %40 : vector<1x128xf32> to vector<2x128xf32>
    %42 = arith.addf %39, %41 : vector<2x128xf32>
    %c0_19 = arith.constant 0 : index
    %c0_20 = arith.constant 0 : index
    %43 = vector.load %arg7[%c0_19, %c0_20] : memref<2x128xf32, #tpu.memory_space<vmem>>, vector<2x128xf32>
    tpu.vector_store %arg7[%c0_19, %c0_20], %42 {strides = array<i32>} : memref<2x128xf32, #tpu.memory_space<vmem>>, vector<2x128xf32>,
    return
  }
  func.func @transform_0(%arg0: i32) -> (i32, i32) {
    %c0_i32 = arith.constant 0 : i32
    %c0_i32_0 = arith.constant 0 : i32
    return %arg0, %c0_i32 : i32, i32
  }
  func.func @transform_1(%arg0: i32) -> (i32, i32) {
    %c0_i32 = arith.constant 0 : i32
    %c0_i32_0 = arith.constant 0 : i32
    %c0_i32_1 = arith.constant 0 : i32
    return %c0_i32, %c0_i32_0 : i32, i32
  }
  func.func @transform_2(%arg0: i32) -> (i32, i32) {
    %c0_i32 = arith.constant 0 : i32
    %c0_i32_0 = arith.constant 0 : i32
    %c0_i32_1 = arith.constant 0 : i32
    return %c0_i32, %c0_i32_0 : i32, i32
  }
  func.func @transform_3(%arg0: i32) -> (i32, i32) {
    %c0_i32 = arith.constant 0 : i32
    %c0_i32_0 = arith.constant 0 : i32
    %c0_i32_1 = arith.constant 0 : i32
    return %c0_i32, %c0_i32_0 : i32, i32
  }
  func.func @transform_4(%arg0: i32) -> (i32, i32) {
    %c0_i32 = arith.constant 0 : i32
    %c0_i32_0 = arith.constant 0 : i32
    %c0_i32_1 = arith.constant 0 : i32
    return %c0_i32, %c0_i32_0 : i32, i32
  }
  func.func @transform_5(%arg0: i32) -> (i32, i32) {
    %c0_i32 = arith.constant 0 : i32
    %c0_i32_0 = arith.constant 0 : i32
    %c0_i32_1 = arith.constant 0 : i32
    return %c0_i32, %c0_i32_0 : i32, i32
  }
  func.func @transform_6(%arg0: i32) -> (i32, i32) {
    %c0_i32 = arith.constant 0 : i32
    %c0_i32_0 = arith.constant 0 : i32
    return %arg0, %c0_i32 : i32, i32
  }
}

</mosaic_0001>

<bundles_post_ra>
// kernel: tpu_custom_call.1
= control target key start
LH: loop header
LB: loop body
LE: loop exit
PB: predicated region body
PF: predicated region fallthrough
CT: control target
= control target key end

     0   :  { %11 = vsyncpa [#allocation3], 0  ;;  %s1540_s0 = inlined_call_operand.vmem [shape: s32[32,1], index: 0, kind: input, shape index: {}]   ;;  %s1541_s1 = inlined_call_operand.vmem [shape: bf16[128,32], index: 1, kind: input, shape index: {}]   ;;  %s1542_s2 = inlined_call_operand.hbm [shape: bf16[32,1152], index: 2, kind: input, shape index: {}]   ;;  %s1543_s3 = inlined_call_operand.vmem [shape: f32[1,384], index: 3, kind: input, shape index: {}]   ;;  %s1544_s4 = inlined_call_operand.hbm [shape: f32[384,128], index: 4, kind: input, shape index: {}]   ;;  %s1545_s5 = inlined_call_operand.vmem [shape: f32[1,128], index: 5, kind: input, shape index: {}]   ;;  %s1546_s6 = inlined_call_operand.hbm [shape: f32[2,128], index: 6, kind: output, shape index: {}]  }
   0x1   :  { %12 = vsyncpa [#allocation6], 0 }
   0x2   :  { %13 = vsyncpa [#allocation4], 0  ;;  %s1333_s21 = smov [#allocation2]   ;;  %s1261_s25 = scalar_lea.hbm %s1542_s2, 2304 }
   0x3   :  { %s23_s22 = sshll.u32 %s1333_s21, 4  ;;  %p1262_p0 = scmp.ne.s32.totalorder %s1542_s2, %s1261_s25  ;;  %s24_s22 = int_to_ptr.vmem [resolvable:$true] %s23_s22 }
   0x4   :  { %p1265_p1 = scmp.lt.u32.totalorder %s1261_s25, %s1542_s2 }
   0x6   :  { %p1267_p2 = pnand %p1265_p1, %p1262_p0 }
   0x8   :  { %1270 = shalt.err (!%p1267_p2)
}
   0x9   :  { %s1271_s30 = scalar_lea.vmem %s24_s22, 2304  ;;  %p1276_p4 = scmp.lt.s32.totalorder %s24_s22, %s24_s22 }
   0xa   :  { %p1272_p3 = scmp.ne.s32.totalorder %s24_s22, %s1271_s30  ;;  %p1277_p5 = scmp.lt.s32.totalorder %s1271_s30, %s1271_s30 }
   0xc   :  { %p1278_p6 = por %p1277_p5, %p1276_p4 }
   0xe   :  { %p1279_p7 = pnand %p1278_p6, %p1272_p3 }
  0x10   :  { %1282 = shalt.err (!%p1279_p7)
}
  0x11   :  { %s1334_s7 = smov 576   ;;  %s1335_s8 = smov 36  }
  0x12   :  { %29 = dma.hbm_to_vmem [thread:$0]  %s1542_s2, 2304, %s24_s22, [#allocation3], %s1334_s7, %s1334_s7, %s1335_s8  }
  0x13   :  { %s1336_s11 = smov [#allocation5]   ;;  %s1283_s15 = scalar_lea.hbm %s1544_s4, 6144 }
  0x14   :  { %s37_s12 = sshll.u32 %s1336_s11, 4  ;;  %p1284_p8 = scmp.ne.s32.totalorder %s1544_s4, %s1283_s15  ;;  %s38_s12 = int_to_ptr.vmem [resolvable:$true] %s37_s12 }
  0x15   :  { %p1287_p9 = scmp.lt.u32.totalorder %s1283_s15, %s1544_s4 }
  0x17   :  { %p1289_p10 = pnand %p1287_p9, %p1284_p8 }
  0x19   :  { %1292 = shalt.err (!%p1289_p10)
}
  0x1a   :  { %s1293_s20 = scalar_lea.vmem %s38_s12, 6144  ;;  %p1298_p12 = scmp.lt.s32.totalorder %s38_s12, %s38_s12 }
  0x1b   :  { %p1294_p11 = scmp.ne.s32.totalorder %s38_s12, %s1293_s20  ;;  %p1299_p13 = scmp.lt.s32.totalorder %s1293_s20, %s1293_s20 }
  0x1d   :  { %p1300_p0 = por %p1299_p13, %p1298_p12 }
  0x1f   :  { %p1301_p1 = pnand %p1300_p0, %p1294_p11 }
  0x21   :  { %1304 = shalt.err (!%p1301_p1)
}
  0x22   :  { %s1337_s2 = smov 128   ;;  %s1338_s21 = smov 8  }
  0x23   :  { %43 = dma.hbm_to_vmem [thread:$0]  %s1544_s4, 6144, %s38_s12, [#allocation6], %s1337_s2, %s1337_s2, %s1338_s21  }
  0x24   :  { %1327 = dma.done.wait [#allocation3], 2304  }
  0x25   :  { %1328 = vsyncadd [#allocation3], 4294964992 }
  0x26   :  { %1329 = dma.done.wait [#allocation6], 6144  }
  0x27   :  { %1330 = vsyncadd [#allocation6], 4294961152  ;;  %v1339_v0 = vmov 0   ;;  %v57_v1 = vld [vmem:[%s1540_s0 + $0x10] sm:$0xff]  ;;  %v55_v2 = vld [vmem:[%s1540_s0] sm:$0xff]  ;;  %v53_v16 = vlaneseq  ;;  %vm308_vm6 = vcmask 261120  }
  0x28   :  { %1226 = vset.pattern.permute.xlu1 %v1339_v0  ;;  %1225 = vset.pattern.permute.xlu0 %v1339_v0  ;;  %v58_v3 = vld [vmem:[%s1540_s0 + $0x18] sm:$0xff]  ;;  %v56_v4 = vld [vmem:[%s1540_s0 + $0x8] sm:$0xff]  ;;  %v1227_v5 = vld [vmem:[%s1541_s1] sm:$0xff]   ;;  %v1340_v23 = vmov 1.0|1.0   ;;  %vm1342_vm7 = vmmov 0  }
  0x29   :  { %347 = vmatprep.mubr.bf16.mxu1 %v1339_v0  ;;  %66 = vperm.xlu1 %1226, %v57_v1   ;;  %v1228_v6 = vld [vmem:[%s1541_s1 + $0x8] sm:$0xff]   ;;  %v1229_v7 = vld [vmem:[%s1541_s1 + $0x10] sm:$0xff]   ;;  %v1237_v9 = vld [vmem:[#allocation2] ss:$36 sps:$4 sm:$0xff]   ;;  %v54_v19 = vand.u32 127, %v53_v16  ;;  %vm633_vm8 = vcmask 1045504  }
  0x2a   :  { %60 = vperm.xlu0 %1225, %v55_v2   ;;  %1090 = vmatprep.subr.bf16.mxu0 %v1227_v5  ;;  %v1235_v8 = vld [vmem:[#allocation2 + $0x4] ss:$36 sps:$4 sm:$0xff]   ;;  %v1230_v10 = vld [vmem:[%s1541_s1 + $0x18] sm:$0xff]   ;;  %v1233_v13 = vld [vmem:[%s1541_s1 + $0x30] sm:$0xff]   ;;  %vm580_vm9 = vcmask 1046528   ;;  %vm704_vm10 = vcmask 1044480  }
  0x2b   :  { %1091 = vmatpush3.bf16.msra.mxu0 %v1227_v5  ;;  %315 = vmatprep.subr.bf16.mxu1 %v1235_v8  ;;  %v1231_v11 = vld [vmem:[%s1541_s1 + $0x20] sm:$0xff]   ;;  %v1232_v12 = vld [vmem:[%s1541_s1 + $0x28] sm:$0xff]   ;;  %v1234_v14 = vld [vmem:[%s1541_s1 + $0x38] sm:$0xff]   ;;  %vm737_vm11 = vcmask 1041409   ;;  %s1344_s23 = smov [#allocation7]  }
  0x2c   :  { %1092 = vmatprep.subr.bf16.mxu0 %v1228_v6  ;;  %316 = vmatpush1.bf16.msra.mxu1 %v1237_v9  ;;  %v1240_v15 = vld [vmem:[#allocation2 + $0x14] ss:$36 sps:$4 sm:$0xff]   ;;  %v1241_v24 = vld [vmem:[#allocation2 + $0x4c] ss:$36 sps:$4 sm:$0xff]   ;;  %v1246_v25 = vld [vmem:[#allocation2 + $0x5c] ss:$36 sps:$4 sm:$0xff]  }
  0x2d   :  { %69 = vperm.xlu1 %1226, %v58_v3   ;;  %v1238_v22 = vld [vmem:[#allocation2 + $0x10] ss:$36 sps:$4 sm:$0xff]   ;;  %v1243_v26 = vld [vmem:[#allocation2 + $0x48] ss:$36 sps:$4 sm:$0xff]   ;;  %v1244_v27 = vld [vmem:[#allocation2 + $0x58] ss:$36 sps:$4 sm:$0xff]   ;;  %317 = vmatprep.subr.bf16.mxu1 %v1241_v24 }
  0x2e   :  { %63 = vperm.xlu0 %1225, %v56_v4   ;;  %v1249_v28 = vld [vmem:[#allocation2 + $0xc] ss:$36 sps:$4 sm:$0xff]   ;;  %v1250_v29 = vld [vmem:[#allocation2 + $0x20] ss:$36 sps:$4 sm:$0xff]   ;;  %v1254_v38 = vld [vmem:[#allocation2 + $0x54] ss:$36 sps:$4 sm:$0xff]  }
  0x2f   :  { %1093 = vmatpush3.bf16.msra.mxu0 %v1228_v6  ;;  %v1247_v35 = vld [vmem:[#allocation2 + $0x8] ss:$36 sps:$4 sm:$0xff]   ;;  %v1252_v39 = vld [vmem:[#allocation2 + $0x50] ss:$36 sps:$4 sm:$0xff]   ;;  %v1257_v40 = vld [vmem:[#allocation2 + $0x1c] ss:$36 sps:$4 sm:$0xff]  }
  0x30   :  { %1094 = vmatprep.subr.bf16.mxu0 %v1229_v7  ;;  %318 = vmatpush1.bf16.msra.mxu1 %v1243_v26  ;;  %v1251_v37 = vld [vmem:[#allocation2 + $0x68] ss:$36 sps:$4 sm:$0xff]   ;;  %v1255_v41 = vld [vmem:[#allocation2 + $0x18] ss:$36 sps:$4 sm:$0xff]   ;;  %v1258_v43 = vld [vmem:[#allocation2 + $0x60] ss:$36 sps:$4 sm:$0xff]  }
  0x31   :  { %368 = vmatprep.subr.bf16.mxu1 %v1249_v28  ;;  %v1260_v42 = vld [vmem:[#allocation2 + $0x64] ss:$36 sps:$4 sm:$0xff]   ;;  %v787_v44 = vld [vmem:[#allocation5 + $0x80] sm:$0xff]  ;;  %v788_v45 = vld [vmem:[#allocation5 + $0x88] sm:$0xff]  ;;  %s973_s24 = sshll.u32 %s1344_s23, 4  ;;  %s974_s24 = int_to_ptr.vmem [resolvable:$true] %s973_s24 }
  0x32   :  { %v1153_v46 = vpack.c.bf16 %v788_v45, %v787_v44  ;;  %v771_v47 = vld [vmem:[#allocation5] sm:$0xff]  ;;  %v772_v48 = vld [vmem:[#allocation5 + $0x8] sm:$0xff]  ;;  %v789_v50 = vld [vmem:[#allocation5 + $0x90] sm:$0xff]  ;;  %s1305_s25 = scalar_lea.vmem %s974_s24, 32  ;;  %p1310_p3 = scmp.lt.s32.totalorder %s974_s24, %s974_s24 }
  0x33   :  { %1095 = vmatpush3.bf16.msra.mxu0 %v1229_v7  ;;  %v1155_v49 = vpack.c.bf16 %v772_v48, %v771_v47  ;;  %v790_v51 = vld [vmem:[#allocation5 + $0x98] sm:$0xff]  ;;  %v773_v53 = vld [vmem:[#allocation5 + $0x10] sm:$0xff]  ;;  %v791_v56 = vld [vmem:[#allocation5 + $0xa0] sm:$0xff]  ;;  %p1306_p2 = scmp.ne.s32.totalorder %s974_s24, %s1305_s25  ;;  %p1311_p4 = scmp.lt.s32.totalorder %s1305_s25, %s1305_s25 }
  0x34   :  { %1096 = vmatprep.subr.bf16.mxu0 %v1230_v10  ;;  %v1157_v52 = vpack.c.bf16 %v790_v51, %v789_v50  ;;  %v774_v54 = vld [vmem:[#allocation5 + $0x18] sm:$0xff]  ;;  %v792_v57 = vld [vmem:[#allocation5 + $0xa8] sm:$0xff]  ;;  %v775_v59 = vld [vmem:[#allocation5 + $0x20] sm:$0xff] }
  0x35   :  { %v1159_v55 = vpack.c.bf16 %v774_v54, %v773_v53  ;;  %v1161_v58 = vpack.c.bf16 %v792_v57, %v791_v56  ;;  %v776_v60 = vld [vmem:[#allocation5 + $0x28] sm:$0xff]  ;;  %v793_v62 = vld [vmem:[#allocation5 + $0xb0] sm:$0xff]  ;;  %v794_v63 = vld [vmem:[#allocation5 + $0xb8] sm:$0xff]  ;;  %v1343_v53 = vmov 0.0   ;;  %p1312_p5 = por %p1311_p4, %p1310_p3 }
  0x36   :  { %v1163_v61 = vpack.c.bf16 %v776_v60, %v775_v59  ;;  %v777_v1 = vld [vmem:[#allocation5 + $0x30] sm:$0xff]  ;;  %v778_v2 = vld [vmem:[#allocation5 + $0x38] sm:$0xff]  ;;  %v795_v4 = vld [vmem:[#allocation5 + $0xc0] sm:$0xff] }
  0x37   :  { %1097 = vmatpush3.bf16.msra.mxu0 %v1230_v10  ;;  %v1167_v3 = vpack.c.bf16 %v778_v2, %v777_v1  ;;  %v796_v5 = vld [vmem:[#allocation5 + $0xc8] sm:$0xff]  ;;  %v779_v7 = vld [vmem:[#allocation5 + $0x40] sm:$0xff]  ;;  %v797_v10 = vld [vmem:[#allocation5 + $0xd0] sm:$0xff]  ;;  %p1313_p6 = pnand %p1312_p5, %p1306_p2 }
  0x38   :  { %1098 = vmatprep.subr.bf16.mxu0 %v1231_v11  ;;  %v1169_v6 = vpack.c.bf16 %v796_v5, %v795_v4  ;;  %v780_v8 = vld [vmem:[#allocation5 + $0x48] sm:$0xff]  ;;  %v783_v26 = vld [vmem:[#allocation5 + $0x60] sm:$0xff]  ;;  %v813_v45 = vld [vmem:[#allocation5 + $0x150] sm:$0xff] }
  0x39   :  { %v1171_v9 = vpack.c.bf16 %v780_v8, %v779_v7  ;;  %v815_v48 = vld [vmem:[#allocation5 + $0x160] sm:$0xff]  ;;  %v817_v51 = vld [vmem:[#allocation5 + $0x170] sm:$0xff] }
  0x3b   :  { %1099 = vmatpush3.bf16.msra.mxu0 %v1231_v11  ;;  %v798_v11 = vld [vmem:[#allocation5 + $0xd8] sm:$0xff] }
  0x3c   :  { %1100 = vmatprep.subr.bf16.mxu0 %v1232_v12 }
  0x3f   :  { %1101 = vmatpush3.bf16.msra.mxu0 %v1232_v12  ;;  %v803_v12 = vld [vmem:[#allocation5 + $0x100] sm:$0xff] }
  0x40   :  { %1102 = vmatprep.subr.bf16.mxu0 %v1233_v13 }
  0x43   :  { %1103 = vmatpush3.bf16.msra.mxu0 %v1233_v13  ;;  %v1173_v13 = vpack.c.bf16 %v798_v11, %v797_v10 }
  0x44   :  { %1104 = vmatprep.subr.bf16.mxu0 %v1234_v14 }
  0x47   :  { %1105 = vmatpush3.bf16.msra.mxu0 %v1234_v14  ;;  %v804_v14 = vld [vmem:[#allocation5 + $0x108] sm:$0xff] }
  0x48   :  { %421 = vmatprep.subr.bf16.mxu0 %v1240_v15 }
  0xa8   :  { %v67_v17 = vpop.permute.xlu1 %66 }
  0xa9   :  { %v61_v18 = vpop.permute.xlu0 %60  ;;  %vm73_vm0 = vcmp.eq.s32.totalorder %v67_v17, %v54_v19  ;;  %v782_v17 = vld [vmem:[#allocation5 + $0x58] sm:$0xff] }
  0xaa   :  { %vm71_vm3 = vcmp.eq.s32.totalorder %v61_v18, %v54_v19  ;;  %v1341_v18 = vmov 0.0|0.0  }
  0xac   :  { %v70_v20 = vpop.permute.xlu1 %69 }
  0xad   :  { %v64_v21 = vpop.permute.xlu0 %63  ;;  %vm74_vm1 = vcmp.eq.s32.totalorder %v70_v20, %v54_v19 }
  0xae   :  { %vm72_vm2 = vcmp.eq.s32.totalorder %v64_v21, %v54_v19  ;;  %vm993_vm4 = vmpackc.low %vm74_vm1, %vm73_vm0  ;;  %v1186_v19 = vpack.c.bf16 %v804_v14, %v803_v12  ;;  %v799_v21 = vld [vmem:[#allocation5 + $0xe0] sm:$0xff] }
  0xaf   :  { %vm991_vm5 = vmpackc.low %vm72_vm2, %vm71_vm3 }
  0xb0   :  { %1106 = vmatprep.mubr.msk.bf16.mxu0 %vm991_vm5, %v1340_v23 }
  0xb1   :  { %1107 = vmatmul.mubr.msk.bf16.vlgmr.msra.gmra.mrb[0].mxu0 %vm993_vm4, %v1340_v23  ;;  %v805_v23 = vld [vmem:[#allocation5 + $0x110] sm:$0xff] }
  0xb2   :  { %422 = vmatpush1.bf16.msra.mxu0 %v1238_v22  ;;  %453 = vmatprep.mubr.bf16.mxu0 %v1339_v0 }
  0xb3   :  { %423 = vmatprep.subr.bf16.mxu0 %v1246_v25 }
  0xb6   :  { %424 = vmatpush1.bf16.msra.mxu0 %v1244_v27 }
  0xb7   :  { %1110 = vmatprep.subr.bf16.mxu0 %v1250_v29 }
 0x184   :  { %v1108_v30 = vpop.f32.mrb[0].mxu0 }
 0x185   :  { %v179_v31 = vpop.f32.mrb[1].mxu0 }
 0x186   :  { %v1109_v32 = vpop.f32.mrb[2].mxu0 }
 0x187   :  { %v195_v33 = vpack.c.bf16 %v1109_v32, %v1108_v30  ;;  %v182_v34 = vpop.f32.mrb[3].mxu0  ;;  %v801_v30 = vld [vmem:[#allocation5 + $0xf0] sm:$0xff]  ;;  %v807_v32 = vld [vmem:[#allocation5 + $0x120] sm:$0xff] }
 0x188   :  { %v194_v36 = vpack.c.bf16 %v182_v34, %v179_v31  ;;  %v802_v31 = vld [vmem:[#allocation5 + $0xf8] sm:$0xff]  ;;  %v808_v34 = vld [vmem:[#allocation5 + $0x128] sm:$0xff] }
 0x18a   :  { %1013 = vmatmul.mubr.msk.bf16.vlgmr.msra.gmra.mrb[0].mxu1 %vm308_vm6, %v194_v36  ;;  %1017 = vmatmul.mubr.msk.bf16.vlgmr.msra.gmra.mrb[4].mxu0 %vm308_vm6, %v194_v36 }
 0x18b   :  { %369 = vmatpush1.bf16.msra.mxu1 %v1247_v35  ;;  %1111 = vmatpush3.bf16.msra.mxu0 %v1250_v29  ;;  %v785_v35 = vld [vmem:[#allocation5 + $0x70] sm:$0xff] }
 0x18c   :  { %1114 = vmatprep.mubr.msk.bf16.mxu0 %vm308_vm6, %v194_v36  ;;  %1112 = vmatprep.subr.bf16.mxu0 %v1251_v37 }
 0x18d   :  { %357 = vmatprep.mubr.bf16.mxu1 %v1339_v0  ;;  %370 = vmatprep.subr.bf16.mxu1 %v1254_v38 }
 0x18f   :  { %1113 = vmatpush3.bf16.msra.mxu0 %v1251_v37  ;;  %371 = vmatpush1.bf16.msra.mxu1 %v1252_v39  ;;  %v1192_v37 = vpack.c.bf16 %v808_v34, %v807_v32  ;;  %v809_v39 = vld [vmem:[#allocation5 + $0x130] sm:$0xff] }
 0x190   :  { %1209 = vmatprep.subr.bf16.mxu1 %v1240_v15  ;;  %v781_v15 = vld [vmem:[#allocation5 + $0x50] sm:$0xff]  ;;  %1185 = vmatprep.subr.bf16.mxu0 %v1341_v18 }
 0x191   :  { %v1175_v20 = vpack.c.bf16 %v782_v17, %v781_v15 }
 0x192   :  { %1014 = vmatmul.mubr.msk.bf16.gmra.mrb[4].mxu1 %vm308_vm6, %v195_v33  ;;  %1115 = vmatmul.mubr.msk.bf16.vlgmr.msra.gmra.mrb[8].mxu0 %vm308_vm6, %v195_v33 }
 0x193   :  { %400 = vmatprep.mubr.bf16.mxu1 %v1339_v0  ;;  %1187 = vmatpush3.bf16.msra.mxu0 %v1186_v19 }
 0x194   :  { %1188 = vmatprep.subr.bf16.mxu0 %v1341_v18  ;;  %1150 = vmatprep.mubr.msk.f32.mxu0 %vm1342_vm7, %v1343_v53 }
 0x19a   :  { %1015 = vmatmul.mubr.msk.bf16.vlgmr.msra.gmra.mrb[8].mxu1 %vm308_vm6, %v194_v36 }
 0x19b   :  { %1211 = vmatpush1.bf16.msra.mxu1 %v1238_v22  ;;  %410 = vmatprep.mubr.bf16.mxu1 %v1339_v0  ;;  %v800_v22 = vld [vmem:[#allocation5 + $0xe8] sm:$0xff] }
 0x19c   :  { %1210 = vmatprep.subr.bf16.mxu1 %v1246_v25  ;;  %v1177_v24 = vpack.c.bf16 %v800_v22, %v799_v21  ;;  %v806_v25 = vld [vmem:[#allocation5 + $0x118] sm:$0xff] }
 0x19d   :  { %v1189_v28 = vpack.c.bf16 %v806_v25, %v805_v23 }
 0x19f   :  { %1212 = vmatpush1.bf16.msra.mxu1 %v1244_v27  ;;  %v784_v27 = vld [vmem:[#allocation5 + $0x68] sm:$0xff]  ;;  %1190 = vmatpush3.bf16.msra.mxu0 %v1189_v28 }
 0x1a0   :  { %474 = vmatprep.subr.bf16.mxu1 %v1257_v40  ;;  %v1179_v29 = vpack.c.bf16 %v784_v27, %v783_v26  ;;  %1191 = vmatprep.subr.bf16.mxu0 %v1341_v18  ;;  %v810_v40 = vld [vmem:[#allocation5 + $0x138] sm:$0xff] }
 0x1a2   :  { %1016 = vmatmul.mubr.msk.bf16.gmra.mrb[12].mxu1 %vm308_vm6, %v195_v33 }
 0x1a3   :  { %463 = vmatprep.mubr.bf16.mxu1 %v1339_v0  ;;  %1193 = vmatpush3.bf16.msra.mxu0 %v1192_v37 }
 0x1a4   :  { %1194 = vmatprep.subr.bf16.mxu0 %v1341_v18 }
 0x1aa   :  { %1018 = vmatmul.mubr.msk.bf16.vlgmr.msra.gmra.mrb[16].mxu1 %vm308_vm6, %v195_v33 }
 0x1ab   :  { %475 = vmatpush1.bf16.msra.mxu1 %v1255_v41  ;;  %506 = vmatprep.mubr.bf16.mxu1 %v1339_v0  ;;  %v1195_v41 = vpack.c.bf16 %v810_v40, %v809_v39  ;;  %v1487_v39 = vshrl.u32 %v53_v16, 7  ;;  %v1494_v16 = vld [vmem:[%s1543_s3] sm:$0x7] }
 0x1ac   :  { %476 = vmatprep.subr.bf16.mxu1 %v1260_v42  ;;  %v811_v42 = vld [vmem:[#allocation5 + $0x140] sm:$0xff] }
 0x1ad   :  { %1196 = vmatpush3.bf16.msra.mxu0 %v1195_v41 }
 0x1ae   :  { %1197 = vmatprep.subr.bf16.mxu0 %v1341_v18 }
 0x1af   :  { %477 = vmatpush1.bf16.msra.mxu1 %v1258_v43  ;;  %v812_v43 = vld [vmem:[#allocation5 + $0x148] sm:$0xff] }
 0x1b0   :  { %1154 = vmatprep.subr.bf16.mxu1 %v1153_v46  ;;  %v1198_v44 = vpack.c.bf16 %v812_v43, %v811_v42  ;;  %v814_v46 = vld [vmem:[#allocation5 + $0x158] sm:$0xff] }
 0x1b1   :  { %v1201_v47 = vpack.c.bf16 %v814_v46, %v813_v45 }
 0x1b2   :  { %1019 = vmatmul.mubr.msk.bf16.vlgmr.msra.gmra.mrb[20].mxu1 %vm308_vm6, %v194_v36  ;;  %v786_v36 = vld [vmem:[#allocation5 + $0x78] sm:$0xff]  ;;  %1199 = vmatpush3.bf16.msra.mxu0 %v1198_v44 }
 0x1b3   :  { %516 = vmatprep.mubr.bf16.mxu1 %v1339_v0  ;;  %1156 = vmatpush3.bf16.msra.mxu1 %v1155_v49  ;;  %v1165_v0 = vpack.c.bf16 %v794_v63, %v793_v62  ;;  %v1183_v38 = vpack.c.bf16 %v786_v36, %v785_v35  ;;  %v816_v49 = vld [vmem:[#allocation5 + $0x168] sm:$0xff] }
 0x1b4   :  { %1158 = vmatprep.subr.bf16.mxu1 %v1157_v52  ;;  %1200 = vmatprep.subr.bf16.mxu0 %v1341_v18  ;;  %v1204_v50 = vpack.c.bf16 %v816_v49, %v815_v48  ;;  %v818_v52 = vld [vmem:[#allocation5 + $0x178] sm:$0xff] }
 0x1b5   :  { %v1207_v54 = vpack.c.bf16 %v818_v52, %v817_v51 }
 0x1b6   :  { %1202 = vmatpush3.bf16.msra.mxu0 %v1201_v47 }
 0x1b7   :  { %1160 = vmatpush3.bf16.msra.mxu1 %v1159_v55  ;;  %1203 = vmatprep.subr.bf16.mxu0 %v1341_v18 }
 0x1b8   :  { %1162 = vmatprep.subr.bf16.mxu1 %v1161_v58 }
 0x1ba   :  { %1020 = vmatmul.mubr.msk.bf16.gmra.mrb[24].mxu1 %vm308_vm6, %v195_v33  ;;  %v1181_v33 = vpack.c.bf16 %v802_v31, %v801_v30  ;;  %1205 = vmatpush3.bf16.msra.mxu0 %v1204_v50  ;;  %v752_v50 = vsub.s32 0, %v1487_v39 }
 0x1bb   :  { %1164 = vmatpush3.bf16.msra.mxu1 %v1163_v61  ;;  %1206 = vmatprep.subr.bf16.mxu0 %v1341_v18 }
 0x1bc   :  { %1166 = vmatprep.subr.bf16.mxu1 %v1165_v0 }
 0x1be   :  { %1208 = vmatpush3.bf16.msra.mxu0 %v1207_v54 }
 0x1bf   :  { %1168 = vmatpush3.bf16.msra.mxu1 %v1167_v3 }
 0x1c0   :  { %1170 = vmatprep.subr.bf16.mxu1 %v1169_v6 }
 0x1c3   :  { %1172 = vmatpush3.bf16.msra.mxu1 %v1171_v9 }
 0x1c4   :  { %1174 = vmatprep.subr.bf16.mxu1 %v1173_v13 }
 0x1c7   :  { %1176 = vmatpush3.bf16.msra.mxu1 %v1175_v20 }
 0x1c8   :  { %1178 = vmatprep.subr.bf16.mxu1 %v1177_v24 }
 0x1cb   :  { %1180 = vmatpush3.bf16.msra.mxu1 %v1179_v29 }
 0x1cc   :  { %1182 = vmatprep.subr.bf16.mxu1 %v1181_v33 }
 0x1cf   :  { %1184 = vmatpush3.bf16.msra.mxu1 %v1183_v38 }
 0x25d   :  { %v349_v55 = vpop.f32.mrb[0].mxu1  ;;  %v455_v56 = vpop.f32.mrb[4].mxu0 }
 0x25e   :  { %v351_v57 = vpop.f32.mrb[1].mxu1  ;;  %v1461_v58 = vpop.f32.mrb[5].mxu0  ;;  %v634_v61 = vrot.slane %v455_v56, 2 }
 0x25f   :  { %v353_v59 = vpop.f32.mrb[2].mxu1  ;;  %v459_v60 = vpop.f32.mrb[6].mxu0  ;;  %v581_v1 = vrot.slane %v351_v57, 1 }
 0x260   :  { %v635_v62 = vrot.slane %v459_v60, 2  ;;  %v355_v63 = vpop.f32.mrb[3].mxu1  ;;  %v1463_v0 = vpop.f32.mrb[7].mxu0 }
 0x261   :  { %v582_v2 = vrot.slane %v355_v63, 1  ;;  %v753_v63 = vrot.slane %v1494_v16, %v752_v50 }
 0x262   :  { %v636_v3 = vsel %vm633_vm8, %v634_v61, %v635_v62 }
 0x263   :  { %v583_v4 = vsel %vm580_vm9, %v581_v1, %v582_v2  ;;  %v592_v5 = vadd.f32 %v582_v2, %v353_v59 }
 0x264   :  { %v591_v6 = vadd.f32 %v583_v4, %v349_v55 }
 0x265   :  { %v595_v7 = vsel %vm580_vm9, %v592_v5, -inf  ;;  %v359_v8 = vpop.f32.mrb[4].mxu1  ;;  %v1116_v9 = vpop.f32.mrb[8].mxu0 }
 0x266   :  { %v596_v10 = vmax.f32 %v591_v6, %v595_v7  ;;  %v361_v11 = vpop.f32.mrb[5].mxu1  ;;  %v561_v12 = vpop.f32.mrb[9].mxu0  ;;  %v708_v17 = vrot.slane %v1116_v9, 3 }
 0x267   :  { %v363_v13 = vpop.f32.mrb[6].mxu1  ;;  %v1468_v14 = vpop.f32.mrb[10].mxu0  ;;  %v584_v21 = vrot.slane %v361_v11, 1  ;;  %v705_v22 = vrot.slane %v561_v12, 3 }
 0x268   :  { %v597_v15 = vrot.slane %v596_v10, 4  ;;  %v709_v18 = vrot.slane %v1468_v14, 3  ;;  %v365_v19 = vpop.f32.mrb[7].mxu1  ;;  %v1471_v20 = vpop.f32.mrb[11].mxu0 }
 0x269   :  { %v585_v23 = vrot.slane %v365_v19, 1  ;;  %v706_v24 = vrot.slane %v1471_v20, 3 }
 0x26a   :  { %v598_v25 = vmax.f32 %v596_v10, %v597_v15  ;;  %v1477_v26 = vsel %vm704_vm10, %v708_v17, %v709_v18 }
 0x26b   :  { %v586_v27 = vsel %vm580_vm9, %v584_v21, %v585_v23  ;;  %v594_v28 = vadd.f32 %v585_v23, %v363_v13  ;;  %v1483_v29 = vsel %vm704_vm10, %v705_v22, %v706_v24 }
 0x26c   :  { %v593_v30 = vadd.f32 %v586_v27, %v359_v8  ;;  %v599_v33 = vrot.slane %v598_v25, 2 }
 0x26d   :  { %v603_v31 = vsel %vm580_vm9, %v594_v28, -inf  ;;  %v402_v32 = vpop.f32.mrb[8].mxu1 }
 0x26e   :  { %v604_v34 = vmax.f32 %v593_v30, %v603_v31  ;;  %v404_v35 = vpop.f32.mrb[9].mxu1  ;;  %v600_v42 = vmax.f32 %v598_v25, %v599_v33 }
 0x26f   :  { %v406_v36 = vpop.f32.mrb[10].mxu1  ;;  %v615_v40 = vrot.slane %v404_v35, 1 }
 0x270   :  { %v605_v37 = vrot.slane %v604_v34, 4  ;;  %v408_v38 = vpop.f32.mrb[11].mxu1  ;;  %v601_v51 = vrot.slane %v600_v42, 1 }
 0x271   :  { %v616_v41 = vrot.slane %v408_v38, 1 }
 0x272   :  { %v606_v43 = vmax.f32 %v604_v34, %v605_v37  ;;  %v602_v1 = vmax.f32 %v600_v42, %v601_v51 }
 0x273   :  { %v617_v44 = vsel %vm580_vm9, %v615_v40, %v616_v41  ;;  %v626_v45 = vadd.f32 %v616_v41, %v406_v36 }
 0x274   :  { %v607_v46 = vrot.slane %v606_v43, 2  ;;  %v625_v47 = vadd.f32 %v617_v44, %v402_v32 }
 0x275   :  { %v645_v48 = vadd.f32 %v635_v62, %v626_v45  ;;  %v412_v49 = vpop.f32.mrb[12].mxu1 }
 0x276   :  { %v608_v52 = vmax.f32 %v606_v43, %v607_v46  ;;  %v644_v53 = vadd.f32 %v636_v3, %v625_v47  ;;  %v414_v54 = vpop.f32.mrb[13].mxu1  ;;  %v756_v46 = vsub.s32 1, %v1487_v39 }
 0x277   :  { %v648_v55 = vsel %vm633_vm8, %v645_v48, -inf  ;;  %v416_v56 = vpop.f32.mrb[14].mxu1  ;;  %v618_v61 = vrot.slane %v414_v54, 1 }
 0x278   :  { %v609_v57 = vrot.slane %v608_v52, 1  ;;  %v649_v59 = vmax.f32 %v644_v53, %v648_v55  ;;  %v418_v60 = vpop.f32.mrb[15].mxu1 }
 0x279   :  { %v619_v62 = vrot.slane %v418_v60, 1 }
 0x27a   :  { %v610_v2 = vmax.f32 %v608_v52, %v609_v57  ;;  %v650_v5 = vrot.slane %v649_v59, 4 }
 0x27b   :  { %v620_v3 = vsel %vm580_vm9, %v618_v61, %v619_v62  ;;  %v628_v4 = vadd.f32 %v619_v62, %v416_v56  ;;  %v757_v56 = vrot.slane %v1494_v16, %v756_v46 }
 0x27c   :  { %v627_v6 = vadd.f32 %v620_v3, %v412_v49  ;;  %v738_v7 = vsel %vm737_vm11, %v610_v2, %v602_v1  ;;  %v651_v12 = vmax.f32 %v649_v59, %v650_v5 }
 0x27d   :  { %v465_v8 = vpop.f32.mrb[16].mxu1  ;;  %v1500_v9 = vadd.f32 %v753_v63, %v738_v7 }
 0x27e   :  { %v467_v10 = vpop.f32.mrb[17].mxu1  ;;  %v637_v13 = vrot.slane %v465_v8, 2  ;;  %v652_v23 = vrot.slane %v651_v12, 2 }
 0x27f   :  { %v469_v11 = vpop.f32.mrb[18].mxu1 }
 0x280   :  { %v638_v15 = vrot.slane %v469_v11, 2  ;;  %v471_v17 = vpop.f32.mrb[19].mxu1  ;;  %v653_v33 = vmax.f32 %v651_v12, %v652_v23 }
 0x282   :  { %v639_v19 = vsel %vm633_vm8, %v637_v13, %v638_v15  ;;  %v647_v21 = vadd.f32 %v638_v15, %v628_v4  ;;  %v654_v48 = vrot.slane %v653_v33, 1 }
 0x283   :  { %v646_v22 = vadd.f32 %v639_v19, %v627_v6  ;;  %v768_v19 = vmax.f32 %v1500_v9, 0.0 }
 0x284   :  { %v656_v25 = vsel %vm633_vm8, %v647_v21, -inf  ;;  %v655_v61 = vmax.f32 %v653_v33, %v654_v48 }
 0x285   :  { %v657_v27 = vmax.f32 %v646_v22, %v656_v25  ;;  %v508_v28 = vpop.f32.mrb[20].mxu1 }
 0x286   :  { %v510_v30 = vpop.f32.mrb[21].mxu1  ;;  %v668_v34 = vrot.slane %v508_v28, 1  ;;  %v760_v28 = vsub.s32 2, %v1487_v39 }
 0x287   :  { %v658_v31 = vrot.slane %v657_v27, 4  ;;  %v512_v32 = vpop.f32.mrb[22].mxu1  ;;  %v686_v38 = vrot.slane %v510_v30, 2 }
 0x288   :  { %v669_v35 = vrot.slane %v512_v32, 1  ;;  %v514_v36 = vpop.f32.mrb[23].mxu1 }
 0x289   :  { %v659_v37 = vmax.f32 %v657_v27, %v658_v31  ;;  %v687_v40 = vrot.slane %v514_v36, 2  ;;  %v761_v31 = vrot.slane %v1494_v16, %v760_v28 }
 0x28a   :  { %v670_v41 = vsel %vm580_vm9, %v668_v34, %v669_v35  ;;  %v679_v42 = vadd.f32 %v669_v35, %v1463_v0 }
 0x28b   :  { %v660_v43 = vrot.slane %v659_v37, 2  ;;  %v678_v44 = vadd.f32 %v670_v41, %v1461_v58  ;;  %v688_v45 = vsel %vm633_vm8, %v686_v38, %v687_v40  ;;  %v1023_v38 = vld [vmem:[%s1545_s5] ss:$0 sm:$0xff] }
 0x28c   :  { %v697_v47 = vadd.f32 %v687_v40, %v679_v42 }
 0x28d   :  { %v661_v49 = vmax.f32 %v659_v37, %v660_v43  ;;  %v696_v50 = vadd.f32 %v688_v45, %v678_v44  ;;  %v518_v51 = vpop.f32.mrb[24].mxu1 }
 0x28e   :  { %v716_v52 = vadd.f32 %v706_v24, %v697_v47  ;;  %v520_v53 = vpop.f32.mrb[25].mxu1  ;;  %v671_v57 = vrot.slane %v518_v51, 1 }
 0x28f   :  { %v662_v54 = vrot.slane %v661_v49, 1  ;;  %v715_v55 = vadd.f32 %v1483_v29, %v696_v50  ;;  %v522_v0 = vpop.f32.mrb[26].mxu1  ;;  %v689_v63 = vrot.slane %v520_v53, 2 }
 0x290   :  { %v719_v58 = vsel %vm704_vm10, %v716_v52, -inf  ;;  %v672_v59 = vrot.slane %v522_v0, 1  ;;  %v524_v60 = vpop.f32.mrb[27].mxu1 }
 0x291   :  { %v720_v62 = vmax.f32 %v715_v55, %v719_v58  ;;  %v690_v1 = vrot.slane %v524_v60, 2  ;;  %v663_v2 = vmax.f32 %v661_v49, %v662_v54 }
 0x292   :  { %v673_v20 = vsel %vm580_vm9, %v671_v57, %v672_v59  ;;  %v681_v24 = vadd.f32 %v672_v59, %v471_v17 }
 0x293   :  { %v721_v3 = vrot.slane %v720_v62, 4  ;;  %v680_v4 = vadd.f32 %v673_v20, %v467_v10  ;;  %v691_v29 = vsel %vm633_vm8, %v689_v63, %v690_v1  ;;  %v742_v5 = vsel %vm737_vm11, %v663_v2, %v655_v61 }
 0x294   :  { %v699_v6 = vadd.f32 %v690_v1, %v681_v24  ;;  %v766_v7 = vadd.f32 %v757_v56, %v742_v5 }
 0x295   :  { %v722_v8 = vmax.f32 %v720_v62, %v721_v3  ;;  %v698_v11 = vadd.f32 %v691_v29, %v680_v4 }
 0x296   :  { %v718_v12 = vadd.f32 %v709_v18, %v699_v6  ;;  %v769_v13 = vmax.f32 %v766_v7, 0.0 }
 0x297   :  { %v717_v15 = vadd.f32 %v1477_v26, %v698_v11  ;;  %v723_v10 = vrot.slane %v722_v8, 2 }
 0x298   :  { %v727_v17 = vsel %vm704_vm10, %v718_v12, -inf  ;;  %890 = vmatprep.mubr.f32.mxu1 %v769_v13 }
 0x299   :  { %v728_v21 = vmax.f32 %v717_v15, %v727_v17  ;;  %891 = vmatmul.mubr.f32.vlgmr.msra.gmra.mrb[28].mxu1 %v768_v19  ;;  %v724_v23 = vmax.f32 %v722_v8, %v723_v10 }
 0x29b   :  { %v729_v22 = vrot.slane %v728_v21, 4  ;;  %v725_v30 = vrot.slane %v724_v23, 1 }
 0x29d   :  { %v730_v25 = vmax.f32 %v728_v21, %v729_v22  ;;  %v726_v26 = vmax.f32 %v724_v23, %v725_v30 }
 0x29f   :  { %v731_v27 = vrot.slane %v730_v25, 2 }
 0x2a1   :  { %v732_v14 = vmax.f32 %v730_v25, %v731_v27 }
 0x2a3   :  { %v733_v18 = vrot.slane %v732_v14, 1 }
 0x2a5   :  { %v734_v32 = vmax.f32 %v732_v14, %v733_v18 }
 0x2a7   :  { %v746_v9 = vsel %vm737_vm11, %v734_v32, %v726_v26 }
 0x2a8   :  { %v767_v33 = vadd.f32 %v761_v31, %v746_v9 }
 0x2aa   :  { %v770_v34 = vmax.f32 %v767_v33, 0.0 }
 0x2ac   :  { %1151 = vmatmul.mubr.f32.vlgmr.msra.gmra.mrb[12].mxu0 %v770_v34 }
 0x36c   :  { %v1070_v35 = vpop.f32.mrb[28].mxu1 }
 0x36d   :  { %v1071_v36 = vpop.f32.mrb[29].mxu1 }
 0x36e   :  { %v1072_v37 = vadd.f32 %v1071_v36, %v1070_v35 }
 0x370   :  { %v893_v39 = vadd.f32 %v1072_v37, %v1023_v38 }
 0x37f   :  { %v962_v40 = vpop.f32.mrb[12].mxu0 }
 0x380   :  { %v963_v41 = vadd.f32 %v962_v40, %v893_v39  ;;  %v1152_v16 = vpop.f32.mrb[13].mxu0 }
 0x382   :  { %966 = vst [vmem:[#allocation7] sm:$0x3] %v963_v41 }
 0x383   :  { %1316 = shalt.err (!%p1313_p6)
}
 0x384   :  { %s1317_s4 = scalar_lea.hbm %s1546_s6, 32 }
 0x385   :  { %p1318_p7 = scmp.ne.s32.totalorder %s1546_s6, %s1317_s4  ;;  %p1321_p8 = scmp.lt.u32.totalorder %s1317_s4, %s1546_s6 }
 0x387   :  { %p1323_p9 = pnand %p1321_p8, %p1318_p7 }
 0x389   :  { %1326 = shalt.err (!%p1323_p9)
}
 0x38a   :  { %976 = dma.vmem_to_hbm [thread:$0]  %s974_s24, 32, %s1546_s6, [#allocation4]  }
 0x38b   :  { %1331 = dma.done.wait [#allocation4], 32  }
 0x38c   :  { %1332 = vsyncadd [#allocation4], 4294967264 }
 0x38d   :  { %980 = vsyncpa [#allocation3], 1 }
 0x38e   :  { %981 = vsyncpa [#allocation6], 1 }
 0x38f   :  { %982 = vsyncpa [#allocation4], 1 }

</bundles_post_ra>
